<compile_context>
chip_gen: v7x
topology: tpu7x:2x2x1
jax: 0.10.0
libtpu: 0.0.40
codegen_flags: <defaults>
</compile_context>

<pallas_src>
from functools import partial

import jax
import jax.numpy as jnp
from jax.experimental import pallas as pl
from jax.experimental.pallas import tpu as pltpu

HIDDEN_DIMS = [128, 1028, 512, 64, 256]


def _round_up(n, m):
    return ((n + m - 1) // m) * m


def _pad_to(a, shape):
    pads = [(0, t - s) for s, t in zip(a.shape, shape)]
    return jnp.pad(a, pads)


# -----------------------------------------------------------------------------
# Kernel: one batch tile of the collapsed affine map.
# -----------------------------------------------------------------------------
def _affine_kernel(x_ref, w_ref, b_ref, o_ref):
    # bf16 operands at native MXU rate, f32 accumulation + f32 bias add.
    acc = jnp.dot(x_ref[...], w_ref[...], preferred_element_type=jnp.float32)
    o_ref[...] = (acc + b_ref[...]).astype(o_ref.dtype)


# -----------------------------------------------------------------------------
# One-time parameter preparation (NOT in the per-call hot path).
# -----------------------------------------------------------------------------
def prepare_simreg_params(params):
    """Fold the 6 Linear layers into a single affine map and pad/cast once.

    params: list of (W, b) with W (fan_in, fan_out) f32, b (1, fan_out) f32.
    Returns (W_padded_bf16 (in_pad, out_pad), b_padded_f32 (1, out_pad), out_size).
    """
    hp = jax.lax.Precision.HIGHEST
    w_tot = params[0][0].astype(jnp.float32)
    b_tot = params[0][1].astype(jnp.float32)
    for w, b in params[1:]:
        w = w.astype(jnp.float32)
        w_tot = jnp.dot(w_tot, w, precision=hp)
        b_tot = jnp.dot(b_tot, w, precision=hp) + b.astype(jnp.float32)

    in_size, out_size = w_tot.shape
    in_pad = _round_up(in_size, 128)    # lane-dense MXU tiles
    out_pad = _round_up(out_size, 128)  # lane-dense output stores (no vst.msk)

    w_p = _pad_to(w_tot, (in_pad, out_pad)).astype(jnp.bfloat16)
    b_p = _pad_to(b_tot, (1, out_pad)).astype(jnp.float32)
    return w_p, b_p, out_size


# -----------------------------------------------------------------------------
# Forward: hot path only pads/casts x, runs the kernel, slices the result.
# -----------------------------------------------------------------------------
@partial(jax.jit, static_argnames=("out_size", "batch_tile"))
def simreg_forward(x, w_p, b_p, *, out_size, batch_tile=256):
    """x: (B, in_size) f32.  w_p/b_p from prepare_simreg_params."""
    B, in_size = x.shape
    in_pad, out_pad = w_p.shape
    assert in_size <= in_pad

    # bf16 packs 16 sublanes per vreg -> batch tile must be a multiple of 16.
    TB = min(_round_up(batch_tile, 16), _round_up(B, 16))
    B_pad = _round_up(B, TB)
    grid = (B_pad // TB,)

    x_p = _pad_to(x, (B_pad, in_pad)).astype(jnp.bfloat16)

    flops = 2 * B_pad * in_pad * out_pad
    bytes_accessed = (B_pad * in_pad * 2            # x (bf16)
                      + in_pad * out_pad * 2        # W (bf16, resident)
                      + out_pad * 4                 # bias (f32)
                      + B_pad * out_pad * 4)        # out (f32)

    out_p = pl.pallas_call(
        _affine_kernel,
        out_shape=jax.ShapeDtypeStruct((B_pad, out_pad), jnp.float32),
        grid=grid,
        in_specs=[
            # x tiles march over the batch.
            pl.BlockSpec((TB, in_pad), lambda i: (i, 0)),
            # Folded weight & bias: constant block index -> VMEM-resident,
            # DMA'd once and reused every grid step.
            pl.BlockSpec((in_pad, out_pad), lambda i: (0, 0)),
            pl.BlockSpec((1, out_pad), lambda i: (0, 0)),
        ],
        out_specs=pl.BlockSpec((TB, out_pad), lambda i: (i, 0)),
        compiler_params=pltpu.CompilerParams(
            # On v7x with grid >= 2, pltpu.CORE_PARALLEL here engages both
            # TensorCores; "parallel" kept for v5e/v6e portability.
            dimension_semantics=("parallel",),
            vmem_limit_bytes=32 << 20,
        ),
        cost_estimate=pl.CostEstimate(
            flops=flops, transcendentals=0, bytes_accessed=bytes_accessed),
    )(x_p, w_p, b_p)

    return out_p[:B, :out_size]


# -----------------------------------------------------------------------------
# Parameter init (mimics nn.Linear default) and layered f32 reference.
# -----------------------------------------------------------------------------
def init_params(key, in_size, out_size):
    dims = [in_size] + HIDDEN_DIMS + [out_size]
    params = []
    for i in range(len(dims) - 1):
        fan_in, fan_out = dims[i], dims[i + 1]
        key, kw, kb = jax.random.split(key, 3)
        bound = 1.0 / (fan_in ** 0.5)
        w = jax.random.uniform(kw, (fan_in, fan_out), jnp.float32, -bound, bound)
        b = jax.random.uniform(kb, (1, fan_out), jnp.float32, -bound, bound)
        params.append((w, b))
    return params


def reference_forward_f32(x, params):
    # Layer-by-layer f32 reference of the original module (dropout = identity).
    h = x
    for w, b in params:
        h = jnp.dot(h, w, precision=jax.lax.Precision.HIGHEST) + b
    return h


if __name__ == "__main__":
    key = jax.random.PRNGKey(0)
    in_size, out_size, batch = 32, 16, 8

    key, kx = jax.random.split(key)
    x = jax.random.normal(kx, (batch, in_size), jnp.float32)
    params = init_params(key, in_size, out_size)

    # One-time prep (fold + pad + cast), outside the hot path.
    w_p, b_p, out_sz = prepare_simreg_params(params)

    out = jax.block_until_ready(
        simreg_forward(x, w_p, b_p, out_size=out_sz))
    assert out.shape == (batch, out_size)

    ref = reference_forward_f32(x, params)
    assert jnp.allclose(out, ref, atol=1e-2, rtol=1e-2), (
        float(jnp.max(jnp.abs(out - ref))))

    # Exercise the multi-tile grid path (batch padding + resident weights).
    key, kx2 = jax.random.split(key)
    x2 = jax.random.normal(kx2, (200, in_size), jnp.float32)
    out2 = jax.block_until_ready(
        simreg_forward(x2, w_p, b_p, out_size=out_sz, batch_tile=64))
    assert out2.shape == (200, out_size)
    ref2 = reference_forward_f32(x2, params)
    assert jnp.allclose(out2, ref2, atol=1e-2, rtol=1e-2), (
        float(jnp.max(jnp.abs(out2 - ref2))))

    print("KERNEL_OK")
</pallas_src>

<mosaic_0001>
module attributes {stable_mosaic.version = 11 : i64} {
  func.func @_affine_kernel(%arg0: i32, %arg1: memref<16x128xbf16, #tpu.memory_space<vmem>>, %arg2: memref<128x128xbf16, #tpu.memory_space<vmem>>, %arg3: memref<1x128xf32, #tpu.memory_space<vmem>>, %arg4: memref<16x128xf32, #tpu.memory_space<vmem>>) attributes {dimension_semantics = [#tpu.dimension_semantics<parallel>], iteration_bounds = array<i64: 1>, scalar_prefetch = 0 : i64, scratch_operands = 0 : i64, tpu.core_type = #tpu.core_type<tc>, window_params = [{transform_indices = @transform_0, window_bounds = array<i64: 16, 128>}, {pipeline_mode = #tpu.pipeline_mode<synchronous>, transform_indices = @transform_1, window_bounds = array<i64: 128, 128>}, {pipeline_mode = #tpu.pipeline_mode<synchronous>, transform_indices = @transform_2, window_bounds = array<i64: 1, 128>}, {transform_indices = @transform_3, window_bounds = array<i64: 16, 128>}]} {
    %c0 = arith.constant 0 : index
    %c0_0 = arith.constant 0 : index
    %0 = vector.load %arg1[%c0, %c0_0] : memref<16x128xbf16, #tpu.memory_space<vmem>>, vector<16x128xbf16>
    %c0_1 = arith.constant 0 : index
    %c0_2 = arith.constant 0 : index
    %1 = vector.load %arg2[%c0_1, %c0_2] : memref<128x128xbf16, #tpu.memory_space<vmem>>, vector<128x128xbf16>
    %cst = arith.constant dense<0.000000e+00> : vector<16x128xf32>
    %2 = tpu.matmul %0, %1, %cst {dimension_numbers = #tpu.dot_dimension_numbers<[1], [0], [0], [1], [0, 0, 1, 1], [], []>} : vector<16x128xbf16>, vector<128x128xbf16>, vector<16x128xf32> -> vector<16x128xf32>
    %c0_3 = arith.constant 0 : index
    %c0_4 = arith.constant 0 : index
    %3 = vector.load %arg3[%c0_3, %c0_4] : memref<1x128xf32, #tpu.memory_space<vmem>>, vector<1x128xf32>
    %4 = vector.broadcast %3 : vector<1x128xf32> to vector<16x128xf32>
    %5 = arith.addf %2, %4 : vector<16x128xf32>
    %c0_5 = arith.constant 0 : index
    %c0_6 = arith.constant 0 : index
    %6 = vector.load %arg4[%c0_5, %c0_6] : memref<16x128xf32, #tpu.memory_space<vmem>>, vector<16x128xf32>
    tpu.vector_store %arg4[%c0_5, %c0_6], %5 {strides = array<i32>} : memref<16x128xf32, #tpu.memory_space<vmem>>, vector<16x128xf32>,
    return
  }
  func.func @transform_0(%arg0: i32) -> (i32, i32) {
    %c0_i32 = arith.constant 0 : i32
    %c0_i32_0 = arith.constant 0 : i32
    return %arg0, %c0_i32 : i32, i32
  }
  func.func @transform_1(%arg0: i32) -> (i32, i32) {
    %c0_i32 = arith.constant 0 : i32
    %c0_i32_0 = arith.constant 0 : i32
    %c0_i32_1 = arith.constant 0 : i32
    return %c0_i32, %c0_i32_0 : i32, i32
  }
  func.func @transform_2(%arg0: i32) -> (i32, i32) {
    %c0_i32 = arith.constant 0 : i32
    %c0_i32_0 = arith.constant 0 : i32
    %c0_i32_1 = arith.constant 0 : i32
    return %c0_i32, %c0_i32_0 : i32, i32
  }
  func.func @transform_3(%arg0: i32) -> (i32, i32) {
    %c0_i32 = arith.constant 0 : i32
    %c0_i32_0 = arith.constant 0 : i32
    return %arg0, %c0_i32 : i32, i32
  }
}

</mosaic_0001>

<bundles_post_ra>
// kernel: simreg_forward.1
= control target key start
LH: loop header
LB: loop body
LE: loop exit
PB: predicated region body
PF: predicated region fallthrough
CT: control target
= control target key end

     0   :  { %8 = vsyncpa [#allocation3], 0  ;;  %s233_s12 = smov [#allocation2]   ;;  %s282_s0 = inlined_call_operand.vmem [shape: bf16[16,128], index: 0, kind: input, shape index: {}]   ;;  %s283_s1 = inlined_call_operand.hbm [shape: bf16[128,128], index: 1, kind: input, shape index: {}]   ;;  %s284_s2 = inlined_call_operand.vmem [shape: f32[1,128], index: 2, kind: input, shape index: {}]   ;;  %s285_s3 = inlined_call_operand.vmem [shape: f32[16,128], index: 3, kind: output, shape index: {}]  }
   0x1   :  { %s16_s13 = sshll.u32 %s233_s12, 4  ;;  %s209_s16 = scalar_lea.hbm %s283_s1, 1024  ;;  %s17_s13 = int_to_ptr.vmem [resolvable:$true] %s16_s13 }
   0x2   :  { %p210_p0 = scmp.ne.s32.totalorder %s283_s1, %s209_s16  ;;  %p213_p1 = scmp.lt.u32.totalorder %s209_s16, %s283_s1 }
   0x4   :  { %p215_p2 = pnand %p213_p1, %p210_p0 }
   0x6   :  { %218 = shalt.err (!%p215_p2)
}
   0x7   :  { %s219_s21 = scalar_lea.vmem %s17_s13, 1024  ;;  %p224_p4 = scmp.lt.s32.totalorder %s17_s13, %s17_s13 }
   0x8   :  { %p220_p3 = scmp.ne.s32.totalorder %s17_s13, %s219_s21  ;;  %p225_p5 = scmp.lt.s32.totalorder %s219_s21, %s219_s21 }
   0xa   :  { %p226_p6 = por %p225_p5, %p224_p4 }
   0xc   :  { %p227_p7 = pnand %p226_p6, %p220_p3 }
   0xe   :  { %230 = shalt.err (!%p227_p7)
}
   0xf   :  { %s234_s22 = smov 64   ;;  %s235_s23 = smov 4  }
  0x10   :  { %22 = dma.hbm_to_vmem [thread:$0]  %s283_s1, 1024, %s17_s13, [#allocation3], %s234_s22, %s234_s22, %s235_s23  }
  0x11   :  { %231 = dma.done.wait [#allocation3], 1024  }
  0x12   :  { %232 = vsyncadd [#allocation3], 4294966272  ;;  %v236_v0 = vmov 0.0   ;;  %vm237_vm0 = vmmov 0   ;;  %v200_v1 = vld [vmem:[#allocation2] sm:$0xff]   ;;  %v201_v2 = vld [vmem:[#allocation2 + $0x8] sm:$0xff]  }
  0x13   :  { %175 = vmatprep.subr.bf16.mxu0 %v236_v0  ;;  %191 = vmatprep.mubr.msk.bf16.mxu0 %vm237_vm0, %v236_v0  ;;  %v202_v3 = vld [vmem:[#allocation2 + $0x10] sm:$0xff]   ;;  %v203_v4 = vld [vmem:[#allocation2 + $0x18] sm:$0xff]   ;;  %v204_v5 = vld [vmem:[#allocation2 + $0x20] sm:$0xff]  }
  0x14   :  { %176 = vmatpush3.bf16.msra.mxu0 %v200_v1  ;;  %v205_v6 = vld [vmem:[#allocation2 + $0x28] sm:$0xff]   ;;  %v206_v7 = vld [vmem:[#allocation2 + $0x30] sm:$0xff]   ;;  %v207_v8 = vld [vmem:[#allocation2 + $0x38] sm:$0xff]  }
  0x15   :  { %177 = vmatprep.subr.bf16.mxu0 %v236_v0  ;;  %v208_v9 = vld [vmem:[%s282_s0] sm:$0xff]  }
  0x16   :  { %v156_v10 = vld [vmem:[%s284_s2] ss:$0 sm:$0xff] }
  0x18   :  { %178 = vmatpush3.bf16.msra.mxu0 %v201_v2 }
  0x19   :  { %179 = vmatprep.subr.bf16.mxu0 %v236_v0 }
  0x1c   :  { %180 = vmatpush3.bf16.msra.mxu0 %v202_v3 }
  0x1d   :  { %181 = vmatprep.subr.bf16.mxu0 %v236_v0 }
  0x20   :  { %182 = vmatpush3.bf16.msra.mxu0 %v203_v4 }
  0x21   :  { %183 = vmatprep.subr.bf16.mxu0 %v236_v0 }
  0x24   :  { %184 = vmatpush3.bf16.msra.mxu0 %v204_v5 }
  0x25   :  { %185 = vmatprep.subr.bf16.mxu0 %v236_v0 }
  0x28   :  { %186 = vmatpush3.bf16.msra.mxu0 %v205_v6 }
  0x29   :  { %187 = vmatprep.subr.bf16.mxu0 %v236_v0 }
  0x2c   :  { %188 = vmatpush3.bf16.msra.mxu0 %v206_v7 }
  0x2d   :  { %189 = vmatprep.subr.bf16.mxu0 %v236_v0 }
  0x30   :  { %190 = vmatpush3.bf16.msra.mxu0 %v207_v8 }
  0x33   :  { %192 = vmatmul.mubr.bf16.vlgmr.msra.gmra.mrb[0].mxu0 %v208_v9 }
 0x106   :  { %v142_v11 = vpop.f32.mrb[0].mxu0 }
 0x107   :  { %v143_v12 = vadd.f32 %v156_v10, %v142_v11  ;;  %v193_v13 = vpop.f32.mrb[1].mxu0 }
 0x108   :  { %v145_v14 = vpop.f32.mrb[2].mxu0 }
 0x109   :  { %149 = vst [vmem:[%s285_s3] sm:$0xff] %v143_v12  ;;  %v146_v15 = vadd.f32 %v156_v10, %v145_v14  ;;  %v194_v16 = vpop.f32.mrb[3].mxu0 }
 0x10b   :  { %150 = vst [vmem:[%s285_s3 + $0x8] sm:$0xff] %v146_v15 }
 0x10c   :  { %155 = vsyncpa [#allocation3], 1 }

</bundles_post_ra>
